<compile_context>
chip_gen: v6e
topology: v6e:2x2x1
jax: 0.10.0
libtpu: 0.0.40
codegen_flags: <defaults>
</compile_context>

<pallas_src>
import functools

import jax
import jax.numpy as jnp
from jax.experimental import pallas as pl
from jax.experimental.pallas import tpu as pltpu


def _rmsnorm_kernel(x_ref, o_ref, *, eps, inv_d):
    # Pass 1: read x, square-and-reduce.  Only the (tm, 1) statistics stay
    # live after this pass — the full-block f32 cast is not reused below.
    xs = x_ref[...].astype(jnp.float32)
    ssq = jnp.sum(xs * xs, axis=-1, keepdims=True)
    inv = jax.lax.rsqrt(ssq * inv_d + eps)        # EUP transcendental (cheap slot)

    # Pass 2: re-read x from the VMEM input buffer (vld: 3 slots/cycle),
    # scale by the per-row inverse RMS, cast back and store.
    o_ref[...] = (x_ref[...].astype(jnp.float32) * inv).astype(o_ref.dtype)


def _sublane_pack(itemsize):
    """Rows per packed vreg sublane group: 8 for f32, 16 for bf16, 32 for i8."""
    return 8 * max(1, 4 // max(1, int(itemsize)))


def _vmem_limit_bytes():
    """Generation-aware scoped-VMEM budget: ~75% of physical, capped at 64 MiB.

    v5e/v6e (128 MiB physical) -> 64 MiB; v7x (64 MiB physical) -> 48 MiB.
    """
    phys = 128 * 1024 * 1024
    try:
        phys = int(pltpu.get_tpu_info().vmem_capacity_bytes)
    except Exception:
        pass  # fall back to a conservative assumption
    return int(min(phys * 3 // 4, 64 * 1024 * 1024))


def _pick_row_tile(M, D, itemsize, vmem_limit):
    """Rows per block: dtype-packed multiple, sized so the double-buffered
    in+out resident set is ~half the scoped-VMEM limit, and capped so the
    grid keeps enough steps for megacore sharding."""
    pack = _sublane_pack(itemsize)
    if M <= pack:
        return M  # block equals full first dim -> always a legal block shape

    # Per-input-block byte target (double-buffered in+out = 4x this).
    target_bytes = max(512 * 1024, min(8 * 1024 * 1024, vmem_limit // 8))
    rows = max(pack, target_bytes // max(1, D * itemsize))
    rows = min(rows, M)
    rows = max(pack, (rows // pack) * pack)

    # Keep >= 8 grid steps when M allows it so a v7x megacore can split rows
    # across both TensorCores and the DMA pipeline has work to overlap.
    min_steps = 8
    if M >= min_steps * pack:
        cap = (M // min_steps) // pack * pack
        rows = min(rows, max(pack, cap))
    return rows


def llmc_rms_norm(hidden_states, eps=1e-6):
    """Pallas equivalent of LlmcRMSNorm.forward.

    hidden_states: (..., hidden_dim), float dtype.
    returns: same shape and dtype.
    """
    orig_shape = hidden_states.shape
    D = orig_shape[-1]
    M = 1
    for d in orig_shape[:-1]:
        M *= d
    x2d = hidden_states.reshape(M, D)
    itemsize = x2d.dtype.itemsize

    vmem_limit = _vmem_limit_bytes()
    tm = _pick_row_tile(M, D, itemsize, vmem_limit)
    grid = (pl.cdiv(M, tm),)

    kernel = functools.partial(
        _rmsnorm_kernel, eps=float(eps), inv_d=1.0 / float(D)
    )

    out = pl.pallas_call(
        kernel,
        out_shape=jax.ShapeDtypeStruct((M, D), hidden_states.dtype),
        grid_spec=pltpu.PrefetchScalarGridSpec(
            num_scalar_prefetch=0,
            grid=grid,
            in_specs=[pl.BlockSpec((tm, D), lambda i: (i, 0))],
            out_specs=pl.BlockSpec((tm, D), lambda i: (i, 0)),
        ),
        compiler_params=pltpu.CompilerParams(
            dimension_semantics=("parallel",),
            vmem_limit_bytes=vmem_limit,
        ),
        cost_estimate=pl.CostEstimate(
            flops=3 * M * D,                         # square + reduce + scale
            transcendentals=M,                       # one rsqrt per row
            bytes_accessed=2 * M * D * itemsize,
        ),
    )(x2d)

    return out.reshape(orig_shape)


def _reference(x, eps):
    xf = x.astype(jnp.float32)
    var = jnp.mean(xf * xf, axis=-1, keepdims=True)
    return (xf * jax.lax.rsqrt(var + eps)).astype(x.dtype)


if __name__ == "__main__":
    # Small, deterministic shapes consistent with the module's usage.
    batch, seq, hidden = 2, 8, 32
    eps = 1e-6
    key = jax.random.PRNGKey(0)

    # float32 path
    x = jax.random.normal(key, (batch, seq, hidden), dtype=jnp.float32)
    y = jax.block_until_ready(llmc_rms_norm(x, eps=eps))
    y_ref = _reference(x, eps)
    assert y.shape == x.shape and y.dtype == x.dtype
    assert jnp.allclose(y, y_ref, atol=1e-5, rtol=1e-5)

    # bfloat16 path (exercises the 16-row sublane-packing branch).
    xb = x.astype(jnp.bfloat16)
    yb = jax.block_until_ready(llmc_rms_norm(xb, eps=eps))
    yb_ref = _reference(xb, eps)
    assert yb.shape == xb.shape and yb.dtype == xb.dtype
    assert jnp.allclose(
        yb.astype(jnp.float32), yb_ref.astype(jnp.float32), atol=1e-2, rtol=1e-2
    )

    print("KERNEL_OK")
</pallas_src>

<mosaic_0001>
module attributes {stable_mosaic.version = 11 : i64} {
  func.func @_rmsnorm_kernel(%arg0: i32, %arg1: memref<16x32xf32, #tpu.memory_space<vmem>>, %arg2: memref<16x32xf32, #tpu.memory_space<vmem>>) attributes {dimension_semantics = [#tpu.dimension_semantics<parallel>], iteration_bounds = array<i64: 1>, scalar_prefetch = 0 : i64, scratch_operands = 0 : i64, tpu.core_type = #tpu.core_type<tc>, window_params = [{transform_indices = @transform_0, window_bounds = array<i64: 16, 32>}, {transform_indices = @transform_1, window_bounds = array<i64: 16, 32>}]} {
    %c0 = arith.constant 0 : index
    %c0_0 = arith.constant 0 : index
    %0 = vector.load %arg1[%c0, %c0_0] : memref<16x32xf32, #tpu.memory_space<vmem>>, vector<16x32xf32>
    %1 = arith.mulf %0, %0 : vector<16x32xf32>
    %cst = arith.constant dense<0.000000e+00> : vector<16xf32>
    %2 = vector.multi_reduction <add>, %1, %cst [1] : vector<16x32xf32> to vector<16xf32>
    %3 = vector.shape_cast %2 : vector<16xf32> to vector<16x1xf32>
    %cst_1 = arith.constant 3.125000e-02 : f32
    %4 = vector.broadcast %cst_1 : f32 to vector<16x1xf32>
    %5 = arith.mulf %3, %4 : vector<16x1xf32>
    %cst_2 = arith.constant 9.99999997E-7 : f32
    %6 = vector.broadcast %cst_2 : f32 to vector<16x1xf32>
    %7 = arith.addf %5, %6 : vector<16x1xf32>
    %8 = math.rsqrt %7 : vector<16x1xf32>
    %c0_3 = arith.constant 0 : index
    %c0_4 = arith.constant 0 : index
    %9 = vector.load %arg1[%c0_3, %c0_4] : memref<16x32xf32, #tpu.memory_space<vmem>>, vector<16x32xf32>
    %10 = vector.broadcast %8 : vector<16x1xf32> to vector<16x32xf32>
    %11 = arith.mulf %9, %10 : vector<16x32xf32>
    %c0_5 = arith.constant 0 : index
    %c0_6 = arith.constant 0 : index
    %12 = vector.load %arg2[%c0_5, %c0_6] : memref<16x32xf32, #tpu.memory_space<vmem>>, vector<16x32xf32>
    tpu.vector_store %arg2[%c0_5, %c0_6], %11 {strides = array<i32>} : memref<16x32xf32, #tpu.memory_space<vmem>>, vector<16x32xf32>,
    return
  }
  func.func @transform_0(%arg0: i32) -> (i32, i32) {
    %c0_i32 = arith.constant 0 : i32
    %c0_i32_0 = arith.constant 0 : i32
    return %arg0, %c0_i32 : i32, i32
  }
  func.func @transform_1(%arg0: i32) -> (i32, i32) {
    %c0_i32 = arith.constant 0 : i32
    %c0_i32_0 = arith.constant 0 : i32
    return %arg0, %c0_i32 : i32, i32
  }
}

</mosaic_0001>

<bundles_post_ra>
// kernel: tpu_custom_call.1
= control target key start
LH: loop header
LB: loop body
LE: loop exit
PB: predicated region body
PF: predicated region fallthrough
CT: control target
= control target key end

     0   :  { %6 = vsyncpa [#allocation3], 0  ;;  %s143_s0 = inlined_call_operand.hbm [shape: f32[16,32], index: 0, kind: input, shape index: {}]   ;;  %s144_s1 = inlined_call_operand.hbm [shape: f32[16,32], index: 1, kind: output, shape index: {}]  }
   0x1   :  { %7 = vsyncpa [#allocation4], 0  ;;  %s113_s6 = smov [#allocation2]  }
   0x2   :  { %s13_s7 = sshll.u32 %s113_s6, 4  ;;  %s14_s7 = int_to_ptr.vmem [resolvable:$true] %s13_s7 }
   0x3   :  { %s77_s8 = scalar_lea.vmem %s14_s7, 256  ;;  %p82_p1 = scmp.lt.s32.totalorder %s14_s7, %s14_s7 }
   0x4   :  { %p78_p0 = scmp.ne.s32.totalorder %s14_s7, %s77_s8  ;;  %p83_p2 = scmp.lt.s32.totalorder %s77_s8, %s77_s8 }
   0x6   :  { %p84_p3 = por %p83_p2, %p82_p1 }
   0x8   :  { %p85_p4 = pnand %p84_p3, %p78_p0 }
   0xa   :  { %88 = shalt.err (!%p85_p4)
}
   0xb   :  { %s114_s9 = smov 128   ;;  %s115_s10 = smov 8  }
   0xc   :  { %19 = dma.hbm_to_vmem [thread:$0]  %s143_s0, 256, %s14_s7, [#allocation3], %s114_s9, %s114_s9, %s115_s10  }
   0xd   :  { %109 = dma.done.wait [#allocation3], 256  }
   0xe   :  { %110 = vsyncadd [#allocation3], 4294967040  ;;  %v23_v0 = vld [vmem:[#allocation2] sm:$0xff]  ;;  %vm27_vm0 = vcmask 261120   ;;  %v24_v1 = vld [vmem:[#allocation2 + $0x8] sm:$0xff]  ;;  %s116_s0 = smov [#allocation5]  }
   0xf   :  { %v25_v2 = vmul.f32 %v23_v0, %v23_v0  ;;  %v26_v3 = vmul.f32 %v24_v1, %v24_v1  ;;  %s49_s13 = sshll.u32 %s116_s0, 4  ;;  %s50_s13 = int_to_ptr.vmem [resolvable:$true] %s49_s13 }
  0x10   :  { %s89_s14 = scalar_lea.vmem %s50_s13, 256  ;;  %p94_p6 = scmp.lt.s32.totalorder %s50_s13, %s50_s13 }
  0x11   :  { %v28_v4 = vsel %vm27_vm0, %v25_v2, 0.0  ;;  %v31_v5 = vsel %vm27_vm0, %v26_v3, 0.0  ;;  %p90_p5 = scmp.ne.s32.totalorder %s50_s13, %s89_s14  ;;  %p95_p7 = scmp.lt.s32.totalorder %s89_s14, %s89_s14 }
  0x12   :  { %29 = vadd.xlane.f32.xlu0 %v28_v4 }
  0x13   :  { %p96_p8 = por %p95_p7, %p94_p6 }
  0x15   :  { %p97_p9 = pnand %p96_p8, %p90_p5 }
  0x16   :  { %32 = vadd.xlane.f32.xlu0 %v31_v5 }
  0x9b   :  { %v30_v6 = vpop.xlane.xlu0 %29 }
  0x9c   :  { %v34_v7 = vmul.f32 0.03125, %v30_v6 }
  0x9e   :  { %v36_v8 = vadd.f32 1e-06, %v34_v7 }
  0x9f   :  { %v33_v9 = vpop.xlane.xlu0 %32 }
  0xa0   :  { %65 = vrsqrt.f32 %v36_v8  ;;  %v35_v10 = vmul.f32 0.03125, %v33_v9 }
  0xa2   :  { %v37_v11 = vadd.f32 1e-06, %v35_v10 }
  0xa4   :  { %67 = vrsqrt.f32 %v37_v11 }
  0xad   :  { %v66_v12 = vpop.eup %65 }
  0xae   :  { %v40_v13 = vmul.f32 %v66_v12, %v23_v0 }
  0xb0   :  { %42 = vst.msk [vmem:[#allocation5] sm:$0xff] %vm27_vm0, %v40_v13 }
  0xb1   :  { %v68_v14 = vpop.eup %67 }
  0xb2   :  { %v41_v15 = vmul.f32 %v68_v14, %v24_v1 }
  0xb4   :  { %43 = vst.msk [vmem:[#allocation5 + $0x8] sm:$0xff] %vm27_vm0, %v41_v15 }
  0xb5   :  { %100 = shalt.err (!%p97_p9)
}
  0xb6   :  { %55 = dma.vmem_to_hbm [thread:$0]  %s50_s13, 256, %s144_s1, [#allocation4], %s114_s9, %s114_s9, %s115_s10  }
  0xb7   :  { %111 = dma.done.wait [#allocation4], 256  }
  0xb8   :  { %112 = vsyncadd [#allocation4], 4294967040 }
  0xb9   :  { %59 = vsyncpa [#allocation3], 1 }
  0xba   :  { %60 = vsyncpa [#allocation4], 1 }

</bundles_post_ra>
